<compile_context>
chip_gen: v7x
topology: tpu7x:2x2x1
jax: 0.10.0
libtpu: 0.0.40
codegen_flags: <defaults>
</compile_context>

<pallas_src>
import functools

import jax
import jax.numpy as jnp
from jax.experimental import pallas as pl
from jax.experimental.pallas import tpu as pltpu

_K = 3                          # kernel_size == stride
_TAPS = _K * _K                 # 9 window taps
_LANE_BLOCK_TARGET = 8192       # target lanes per block (multiple of 128)
_BLOCK_BYTES_TARGET = 6 * 1024 * 1024
_MIN_GRID_STEPS = 8             # keep >= ~8 steps so v7x's 2 TCs both pipeline
_VMEM_CAP = 48 * 1024 * 1024    # stay under v7x's 64 MiB/TC physical VMEM


def _cdiv(a, b):
    return -(-a // b)


def _round_up(a, b):
    return _cdiv(a, b) * b


def _pool9_kernel(x_ref, o_ref):
    # x_ref: (9, R, LB) -- tap, output-row, lane.   o_ref: (R, LB).
    # Max over the 9 taps: static slices along the untiled leading dim,
    # pure VPU work, dense unmasked store.
    o_ref[...] = functools.reduce(jnp.maximum, [x_ref[k] for k in range(_TAPS)])


def _neg_value(dtype):
    if jnp.issubdtype(dtype, jnp.floating):
        return float("-inf")
    if jnp.issubdtype(dtype, jnp.integer):
        return int(jnp.iinfo(dtype).min)
    raise TypeError(f"unsupported dtype for max pooling: {dtype}")


@jax.jit
def maxpool2d_k3_ceil(x):
    """MaxPool2d(kernel_size=3, stride=3, padding=0, ceil_mode=True) on NCHW."""
    if x.ndim != 4:
        raise ValueError(f"expected NCHW input, got shape {x.shape}")
    n, c, h, w = x.shape
    if h < _K or w < _K:
        # PyTorch errors for inputs smaller than the (unpadded) kernel.
        raise ValueError("MaxPool2d(kernel_size=3, padding=0) needs H, W >= 3")

    neg = _neg_value(x.dtype)
    elt = jnp.dtype(x.dtype).itemsize
    sub = max(8, 32 // elt)        # sublane tile: 8 f32/i32, 16 bf16, 32 i8

    # ceil_mode output sizes (stride == kernel, padding == 0: every window
    # start lies inside the input; ceil_mode only pads the trailing windows).
    oh = _cdiv(h - _K, _K) + 1
    ow = _cdiv(w - _K, _K) + 1
    hp, wp = oh * _K, ow * _K
    lanes = n * c * ow

    # ---- lane (last-dim) blocking: multiples of 128 that evenly divide Lp --
    lp0 = _round_up(lanes, 128)
    nlb = _cdiv(lp0, _LANE_BLOCK_TARGET)
    lb = _round_up(_cdiv(lp0, nlb), 128)
    lp = nlb * lb

    # ---- row (sublane-dim) blocking: multiples of the dtype sublane tile ---
    oh_sub = _round_up(oh, sub)
    r_target = max(sub, (_BLOCK_BYTES_TARGET // (_TAPS * sub * lb * elt)) * sub)
    desired_row_steps = max(1, _cdiv(_MIN_GRID_STEPS, nlb))
    r_cap = max(sub, (oh_sub // desired_row_steps // sub) * sub)
    r = max(sub, min(r_target, r_cap, oh_sub))
    ohp = _round_up(oh, r)
    nrb = ohp // r

    # ---- single fused staging copy:
    #   pad (H, W) for ceil_mode, de-interleave the 3x3 taps to the leading
    #   dim, put OH on the sublane axis and (N, C, OW) -- OW innermost, so the
    #   copy is a local stride-3 shuffle -- on the lane axis, then align OH/
    #   lanes to the block sizes with the neg pad value (sliced off later).
    xp = x
    if hp != h or wp != w:
        xp = jnp.pad(
            x, ((0, 0), (0, 0), (0, hp - h), (0, wp - w)), constant_values=neg
        )
    xt = (
        xp.reshape(n, c, oh, _K, ow, _K)
        .transpose(3, 5, 2, 0, 1, 4)            # (kh, kw, oh, n, c, ow)
        .reshape(_TAPS, oh, lanes)
    )
    if ohp != oh or lp != lanes:
        xt = jnp.pad(
            xt, ((0, 0), (0, ohp - oh), (0, lp - lanes)), constant_values=neg
        )

    in_block = _TAPS * r * lb * elt
    out_block = r * lb * elt
    vmem_limit = int(
        min(_VMEM_CAP, max(16 * 1024 * 1024, 4 * (in_block + out_block)))
    )

    out = pl.pallas_call(
        _pool9_kernel,
        out_shape=jax.ShapeDtypeStruct((ohp, lp), x.dtype),
        grid=(nrb, nlb),
        in_specs=[pl.BlockSpec((_TAPS, r, lb), lambda i, j: (0, i, j))],
        out_specs=pl.BlockSpec((r, lb), lambda i, j: (i, j)),
        compiler_params=pltpu.CompilerParams(
            dimension_semantics=("parallel", "parallel"),
            vmem_limit_bytes=vmem_limit,
        ),
    )(xt)
    # TODO(synk): optionally set pipeline_mode=pl.Buffered(3) on the input
    # BlockSpec for v7x if per-step DMA issue latency is still exposed.

    # (OHp, Lp) -> slice off alignment padding -> NCHW (output is ~9x smaller).
    return out[:oh, :lanes].reshape(oh, n, c, ow).transpose(1, 2, 0, 3)


def _reference(x):
    # Pure-JAX reference of the same semantics, for correctness checks.
    n, c, h, w = x.shape
    oh = _cdiv(h - _K, _K) + 1
    ow = _cdiv(w - _K, _K) + 1
    neg = _neg_value(x.dtype)
    xp = jnp.pad(
        x,
        ((0, 0), (0, 0), (0, oh * _K - h), (0, ow * _K - w)),
        constant_values=neg,
    )
    return jnp.max(xp.reshape(n, c, oh, _K, ow, _K), axis=(3, 5))


if __name__ == "__main__":
    key = jax.random.PRNGKey(0)
    k1, k2, k3, k4 = jax.random.split(key, 4)

    # Main case matching the module spec.
    x = jax.random.normal(k1, (2, 4, 16, 16), dtype=jnp.float32)
    out = jax.block_until_ready(maxpool2d_k3_ceil(x))
    assert out.shape == (2, 4, 6, 6), out.shape
    assert jnp.array_equal(out, _reference(x)), "mismatch vs reference (f32 16x16)"

    # Ragged spatial dims (ceil_mode tail windows + padded row/lane blocks).
    x2 = jax.random.normal(k2, (1, 2, 7, 5), dtype=jnp.float32)
    out2 = jax.block_until_ready(maxpool2d_k3_ceil(x2))
    assert out2.shape == (1, 2, 3, 2), out2.shape
    assert jnp.array_equal(out2, _reference(x2)), "mismatch vs reference (f32 7x5)"

    # bf16 stays bf16 end-to-end (sublane tile 16).
    x3 = jax.random.normal(k3, (2, 3, 16, 16), dtype=jnp.bfloat16)
    out3 = jax.block_until_ready(maxpool2d_k3_ceil(x3))
    assert out3.dtype == jnp.bfloat16 and out3.shape == (2, 3, 6, 6)
    assert jnp.array_equal(out3, _reference(x3)), "mismatch vs reference (bf16)"

    # Integer path (iinfo.min padding), previously untested.
    x4 = jax.random.randint(k4, (2, 2, 9, 10), minval=-100, maxval=100,
                            dtype=jnp.int32)
    out4 = jax.block_until_ready(maxpool2d_k3_ceil(x4))
    assert out4.shape == (2, 2, 3, 4), out4.shape
    assert jnp.array_equal(out4, _reference(x4)), "mismatch vs reference (int32)"

    print("KERNEL_OK")
</pallas_src>

<mosaic_0001>
module attributes {stable_mosaic.version = 11 : i64} {
  func.func @_pool9_kernel(%arg0: i32, %arg1: i32, %arg2: memref<9x8x128xf32, #tpu.memory_space<vmem>>, %arg3: memref<8x128xf32, #tpu.memory_space<vmem>>) attributes {dimension_semantics = [#tpu.dimension_semantics<parallel>, #tpu.dimension_semantics<parallel>], iteration_bounds = array<i64: 1, 1>, scalar_prefetch = 0 : i64, scratch_operands = 0 : i64, tpu.core_type = #tpu.core_type<tc>, window_params = [{transform_indices = @transform_0, window_bounds = array<i64: 9, 8, 128>}, {transform_indices = @transform_1, window_bounds = array<i64: 8, 128>}]} {
    %c0 = arith.constant 0 : index
    %c0_0 = arith.constant 0 : index
    %c0_1 = arith.constant 0 : index
    %0 = vector.load %arg2[%c0, %c0_0, %c0_1] : memref<9x8x128xf32, #tpu.memory_space<vmem>>, vector<1x8x128xf32>
    %1 = vector.shape_cast %0 : vector<1x8x128xf32> to vector<8x128xf32>
    %c1 = arith.constant 1 : index
    %c0_2 = arith.constant 0 : index
    %c0_3 = arith.constant 0 : index
    %2 = vector.load %arg2[%c1, %c0_2, %c0_3] : memref<9x8x128xf32, #tpu.memory_space<vmem>>, vector<1x8x128xf32>
    %3 = vector.shape_cast %2 : vector<1x8x128xf32> to vector<8x128xf32>
    %c2 = arith.constant 2 : index
    %c0_4 = arith.constant 0 : index
    %c0_5 = arith.constant 0 : index
    %4 = vector.load %arg2[%c2, %c0_4, %c0_5] : memref<9x8x128xf32, #tpu.memory_space<vmem>>, vector<1x8x128xf32>
    %5 = vector.shape_cast %4 : vector<1x8x128xf32> to vector<8x128xf32>
    %c3 = arith.constant 3 : index
    %c0_6 = arith.constant 0 : index
    %c0_7 = arith.constant 0 : index
    %6 = vector.load %arg2[%c3, %c0_6, %c0_7] : memref<9x8x128xf32, #tpu.memory_space<vmem>>, vector<1x8x128xf32>
    %7 = vector.shape_cast %6 : vector<1x8x128xf32> to vector<8x128xf32>
    %c4 = arith.constant 4 : index
    %c0_8 = arith.constant 0 : index
    %c0_9 = arith.constant 0 : index
    %8 = vector.load %arg2[%c4, %c0_8, %c0_9] : memref<9x8x128xf32, #tpu.memory_space<vmem>>, vector<1x8x128xf32>
    %9 = vector.shape_cast %8 : vector<1x8x128xf32> to vector<8x128xf32>
    %c5 = arith.constant 5 : index
    %c0_10 = arith.constant 0 : index
    %c0_11 = arith.constant 0 : index
    %10 = vector.load %arg2[%c5, %c0_10, %c0_11] : memref<9x8x128xf32, #tpu.memory_space<vmem>>, vector<1x8x128xf32>
    %11 = vector.shape_cast %10 : vector<1x8x128xf32> to vector<8x128xf32>
    %c6 = arith.constant 6 : index
    %c0_12 = arith.constant 0 : index
    %c0_13 = arith.constant 0 : index
    %12 = vector.load %arg2[%c6, %c0_12, %c0_13] : memref<9x8x128xf32, #tpu.memory_space<vmem>>, vector<1x8x128xf32>
    %13 = vector.shape_cast %12 : vector<1x8x128xf32> to vector<8x128xf32>
    %c7 = arith.constant 7 : index
    %c0_14 = arith.constant 0 : index
    %c0_15 = arith.constant 0 : index
    %14 = vector.load %arg2[%c7, %c0_14, %c0_15] : memref<9x8x128xf32, #tpu.memory_space<vmem>>, vector<1x8x128xf32>
    %15 = vector.shape_cast %14 : vector<1x8x128xf32> to vector<8x128xf32>
    %c8 = arith.constant 8 : index
    %c0_16 = arith.constant 0 : index
    %c0_17 = arith.constant 0 : index
    %16 = vector.load %arg2[%c8, %c0_16, %c0_17] : memref<9x8x128xf32, #tpu.memory_space<vmem>>, vector<1x8x128xf32>
    %17 = vector.shape_cast %16 : vector<1x8x128xf32> to vector<8x128xf32>
    %18 = arith.maximumf %1, %3 : vector<8x128xf32>
    %19 = arith.maximumf %18, %5 : vector<8x128xf32>
    %20 = arith.maximumf %19, %7 : vector<8x128xf32>
    %21 = arith.maximumf %20, %9 : vector<8x128xf32>
    %22 = arith.maximumf %21, %11 : vector<8x128xf32>
    %23 = arith.maximumf %22, %13 : vector<8x128xf32>
    %24 = arith.maximumf %23, %15 : vector<8x128xf32>
    %25 = arith.maximumf %24, %17 : vector<8x128xf32>
    %c0_18 = arith.constant 0 : index
    %c0_19 = arith.constant 0 : index
    %26 = vector.load %arg3[%c0_18, %c0_19] : memref<8x128xf32, #tpu.memory_space<vmem>>, vector<8x128xf32>
    tpu.vector_store %arg3[%c0_18, %c0_19], %25 {strides = array<i32>} : memref<8x128xf32, #tpu.memory_space<vmem>>, vector<8x128xf32>,
    return
  }
  func.func @transform_0(%arg0: i32, %arg1: i32) -> (i32, i32, i32) {
    %c0_i32 = arith.constant 0 : i32
    %c0_i32_0 = arith.constant 0 : i32
    return %c0_i32, %arg0, %arg1 : i32, i32, i32
  }
  func.func @transform_1(%arg0: i32, %arg1: i32) -> (i32, i32) {
    %c0_i32 = arith.constant 0 : i32
    return %arg0, %arg1 : i32, i32
  }
}

</mosaic_0001>

<bundles_post_ra>
// kernel: maxpool2d_k3_ceil.1
= control target key start
LH: loop header
LB: loop body
LE: loop exit
PB: predicated region body
PF: predicated region fallthrough
CT: control target
= control target key end

     0   :  { %s86_s0 = inlined_call_operand.vmem [shape: f32[9,8,128], index: 0, kind: input, shape index: {}]   ;;  %s87_s1 = inlined_call_operand.vmem [shape: f32[8,128], index: 1, kind: output, shape index: {}]  }
   0x1   :  { %v8_v0 = vld [vmem:[%s86_s0] sm:$0xff]  ;;  %v38_v1 = vld [vmem:[%s86_s0 + $0x8] sm:$0xff]  ;;  %v39_v2 = vld [vmem:[%s86_s0 + $0x10] sm:$0xff] }
   0x2   :  { %v25_v3 = vmax.f32 %v8_v0, %v38_v1  ;;  %v40_v4 = vld [vmem:[%s86_s0 + $0x18] sm:$0xff]  ;;  %v41_v6 = vld [vmem:[%s86_s0 + $0x20] sm:$0xff]  ;;  %v42_v8 = vld [vmem:[%s86_s0 + $0x28] sm:$0xff] }
   0x3   :  { %v43_v10 = vld [vmem:[%s86_s0 + $0x30] sm:$0xff]  ;;  %v44_v12 = vld [vmem:[%s86_s0 + $0x38] sm:$0xff]  ;;  %v45_v14 = vld [vmem:[%s86_s0 + $0x40] sm:$0xff] }
   0x4   :  { %v26_v5 = vmax.f32 %v25_v3, %v39_v2 }
   0x6   :  { %v27_v7 = vmax.f32 %v26_v5, %v40_v4 }
   0x8   :  { %v28_v9 = vmax.f32 %v27_v7, %v41_v6 }
   0xa   :  { %v29_v11 = vmax.f32 %v28_v9, %v42_v8 }
   0xc   :  { %v30_v13 = vmax.f32 %v29_v11, %v43_v10 }
   0xe   :  { %v31_v15 = vmax.f32 %v30_v13, %v44_v12 }
  0x10   :  { %v32_v16 = vmax.f32 %v31_v15, %v45_v14 }
  0x12   :  { %33 = vst [vmem:[%s87_s1] sm:$0xff] %v32_v16 }

</bundles_post_ra>
